<compile_context>
chip_gen: v7x
topology: tpu7x:2x2x1
jax: 0.10.0
libtpu: 0.0.40
codegen_flags: <defaults>
</compile_context>

<pallas_src>
import math

import jax
import jax.numpy as jnp
from jax.experimental import pallas as pl
from jax.experimental.pallas import tpu as pltpu


def _round_up(x, m):
    return ((x + m - 1) // m) * m


# ----------------------------------------------------------------------------
# Pallas kernel: fused 3x3 conv (+ bias + ReLU), one image per grid step.
# ----------------------------------------------------------------------------
def _make_conv3x3_kernel(stride, Wq, Lout):
    """Kernel for a 3x3 / pad=1 conv at the given stride.

    Input is pre-split into stride*stride parity planes, each flattened
    row-major with pitch Wq, so tap (kh, kw) is the unit-stride lane slice
    [off, off + Lout) of plane (kh % s)*s + (kw % s), off = (kh//s)*Wq + kw//s.
    Columns ow >= Wo of each output row are garbage; the wrapper slices them
    away.
    """
    taps = []
    for kh in range(3):
        for kw in range(3):
            plane = (kh % stride) * stride + (kw % stride)
            off = (kh // stride) * Wq + (kw // stride)
            taps.append((kh, kw, plane, off))

    def kernel(planes_ref, w_ref, b_ref, o_ref):
        # planes_ref: (1, s*s, Cin, Lq)  bf16
        # w_ref:      (3, 3, Cout, Cin)  bf16
        # b_ref:      (Cout, 1)          f32
        # o_ref:      (1, Cout, Lout)    f32
        n_planes = planes_ref.shape[1]
        plane_vals = [planes_ref[0, p] for p in range(n_planes)]   # (Cin, Lq)
        acc = None
        for kh, kw, p, off in taps:
            x = plane_vals[p][:, off:off + Lout]                   # (Cin, Lout)
            part = jnp.dot(w_ref[kh, kw], x,
                           preferred_element_type=jnp.float32)     # (Cout, Lout)
            acc = part if acc is None else acc + part
        y = jnp.maximum(acc + b_ref[...], 0.0)                     # f32 epilogue
        o_ref[0] = y.astype(o_ref.dtype)

    return kernel


def conv3x3_bias_relu(x_nchw, w_taps, b_col, *, stride,
                      compute_dtype=jnp.bfloat16):
    """3x3 conv, padding=1, given stride, + bias + ReLU.  NCHW in / NCHW out."""
    N, Cin, H, W = x_nchw.shape
    Cout = w_taps.shape[2]
    s = int(stride)
    Ho = (H - 1) // s + 1
    Wo = (W - 1) // s + 1
    Hp = _round_up(H + 2, s)
    Wp = _round_up(W + 2, s)
    Hq, Wq = Hp // s, Wp // s
    Lq = _round_up(Hq * Wq + 2, 128)      # +2 covers the widest tap slice
    Lout = Ho * Wq

    # Layout plumbing (input-sized; no 9x im2col materialization in HBM):
    # zero-pad, split into s*s parity planes, flatten each plane row-major.
    xp = jnp.pad(x_nchw.astype(compute_dtype),
                 ((0, 0), (0, 0), (1, Hp - H - 1), (1, Wp - W - 1)))
    xq = xp.reshape(N, Cin, Hq, s, Wq, s)
    xq = jnp.transpose(xq, (0, 3, 5, 1, 2, 4))        # (N, s, s, Cin, Hq, Wq)
    xq = xq.reshape(N, s * s, Cin, Hq * Wq)
    planes = jnp.pad(xq, ((0, 0), (0, 0), (0, 0), (0, Lq - Hq * Wq)))

    kernel = _make_conv3x3_kernel(s, Wq, Lout)
    out_flat = pl.pallas_call(
        kernel,
        out_shape=jax.ShapeDtypeStruct((N, Cout, Lout), jnp.float32),
        grid_spec=pltpu.PrefetchScalarGridSpec(
            num_scalar_prefetch=0,
            grid=(N,),                                  # one image per step
            in_specs=[
                pl.BlockSpec((1, s * s, Cin, Lq), lambda n: (n, 0, 0, 0)),
                pl.BlockSpec((3, 3, Cout, Cin), lambda n: (0, 0, 0, 0)),
                pl.BlockSpec((Cout, 1), lambda n: (0, 0)),
            ],
            out_specs=pl.BlockSpec((1, Cout, Lout), lambda n: (n, 0, 0)),
        ),
        compiler_params=pltpu.CompilerParams(
            dimension_semantics=("parallel",)),         # megacore / v7x 2 TCs
    )(planes, w_taps, b_col)

    # (N, Cout, Ho*Wq) -> NCHW: free reshape + drop the Wq-Wo garbage columns.
    return out_flat.reshape(N, Cout, Ho, Wq)[:, :, :, :Wo]


def _maxpool2x2_nchw(x):
    n, c, h, w = x.shape
    x = x[:, :, :2 * (h // 2), :2 * (w // 2)]
    return x.reshape(n, c, h // 2, 2, w // 2, 2).max(axis=(3, 5))


# ----------------------------------------------------------------------------
# Module equivalent
# ----------------------------------------------------------------------------
class ImageEncoderFlatInputPallas:
    """JAX/Pallas equivalent of ImageEncoderFlatInput.

    Reshape(-1, C, 32, 32), then per layer: Conv2d(k=3, padding=1,
    stride=2 (or stride=1 + MaxPool2d(2,2) when useMaxPool)) + ReLU,
    optional Flatten.
    """

    def __init__(self, input_channels, layers_channels, prefix,
                 useMaxPool=False, addFlatten=False, *, key,
                 compute_dtype=jnp.bfloat16):
        self.input_channels = input_channels
        self.layers_channels = list(layers_channels)
        self.prefix = prefix
        self.useMaxPool = useMaxPool
        self.addFlatten = addFlatten
        self.stride = 1 if useMaxPool else 2
        self.compute_dtype = compute_dtype

        # Deterministic init mimicking torch Conv2d default
        # (uniform(-1/sqrt(fan_in), 1/sqrt(fan_in))).  Weights stored already
        # pre-transposed for the kernel: (kh, kw, Cout, Cin) in compute dtype,
        # bias as a (Cout, 1) f32 column (lane-broadcast in the epilogue).
        self.params = []
        pr_ch = input_channels
        for ch in self.layers_channels:
            key, kw_, kb_ = jax.random.split(key, 3)
            fan_in = pr_ch * 9
            bound = 1.0 / math.sqrt(fan_in)
            w_oihw = jax.random.uniform(kw_, (ch, pr_ch, 3, 3),
                                        minval=-bound, maxval=bound,
                                        dtype=jnp.float32)
            b = jax.random.uniform(kb_, (ch,), minval=-bound, maxval=bound,
                                   dtype=jnp.float32)
            w_taps = jnp.transpose(w_oihw, (2, 3, 0, 1)).astype(compute_dtype)
            self.params.append((w_taps, b.reshape(ch, 1)))
            pr_ch = ch

    def __call__(self, data):
        x = data.reshape(-1, self.input_channels, 32, 32)   # NCHW, like torch
        for (w_taps, b_col) in self.params:
            x = conv3x3_bias_relu(x, w_taps, b_col, stride=self.stride,
                                  compute_dtype=self.compute_dtype)
            if self.useMaxPool:
                x = _maxpool2x2_nchw(x)                      # plain-JAX pool
        if self.addFlatten:
            x = x.reshape(x.shape[0], -1)
        return x


# ----------------------------------------------------------------------------
# Pure-JAX reference (same bf16 operand rounding, f32 accumulation)
# ----------------------------------------------------------------------------
def reference_forward(enc, data):
    x = data.reshape(-1, enc.input_channels, 32, 32)
    for (w_taps, b_col) in enc.params:
        w_oihw = jnp.transpose(w_taps.astype(jnp.float32), (2, 3, 0, 1))
        xb = x.astype(enc.compute_dtype).astype(jnp.float32)
        y = jax.lax.conv_general_dilated(
            xb, w_oihw, window_strides=(enc.stride, enc.stride),
            padding=((1, 1), (1, 1)),
            dimension_numbers=("NCHW", "OIHW", "NCHW"),
            precision=jax.lax.Precision.HIGHEST)
        y = jnp.maximum(y + b_col.reshape(1, -1, 1, 1), 0.0)
        if enc.useMaxPool:
            y = _maxpool2x2_nchw(y)
        x = y
    if enc.addFlatten:
        x = x.reshape(x.shape[0], -1)
    return x


# ----------------------------------------------------------------------------
# Demo / smoke test
# ----------------------------------------------------------------------------
if __name__ == "__main__":
    key = jax.random.PRNGKey(0)
    kdata, kparams = jax.random.split(key)

    input_channels = 4
    layers_channels = [8, 16]
    batch = 2

    enc = ImageEncoderFlatInputPallas(
        input_channels, layers_channels, "enc",
        useMaxPool=False, addFlatten=True, key=kparams)

    # Flat input: (batch, C*32*32); module reshapes to (-1, C, 32, 32).
    data = jax.random.normal(kdata, (batch, input_channels * 32 * 32),
                             dtype=jnp.float32)

    out = jax.jit(lambda d: enc(d))(data)
    out = jax.block_until_ready(out)

    # Conv(s=2): 32 -> 16 -> 8 spatial; flatten -> (batch, 16*8*8)
    assert out.shape == (batch, layers_channels[-1] * 8 * 8), out.shape
    assert bool(jnp.all(out >= 0.0))            # ReLU output is non-negative
    assert bool(jnp.isfinite(out).all())

    ref = jax.block_until_ready(reference_forward(enc, data))
    assert bool(jnp.allclose(out, ref, atol=2e-2, rtol=2e-2)), (
        float(jnp.max(jnp.abs(out - ref))))

    print("KERNEL_OK")
</pallas_src>

<mosaic_0001>
module attributes {stable_mosaic.version = 11 : i64} {
  func.func @kernel(%arg0: i32, %arg1: memref<1x4x4x384xbf16, #tpu.memory_space<vmem>>, %arg2: memref<3x3x8x4xbf16, #tpu.memory_space<vmem>>, %arg3: memref<8x1xf32, #tpu.memory_space<vmem>>, %arg4: memref<1x8x272xf32, #tpu.memory_space<vmem>>) attributes {dimension_semantics = [#tpu.dimension_semantics<parallel>], iteration_bounds = array<i64: 2>, scalar_prefetch = 0 : i64, scratch_operands = 0 : i64, tpu.core_type = #tpu.core_type<tc>, window_params = [{transform_indices = @transform_0, window_bounds = array<i64: 1, 4, 4, 384>}, {pipeline_mode = #tpu.pipeline_mode<synchronous>, transform_indices = @transform_1, window_bounds = array<i64: 3, 3, 8, 4>}, {pipeline_mode = #tpu.pipeline_mode<synchronous>, transform_indices = @transform_2, window_bounds = array<i64: 8, 1>}, {transform_indices = @transform_3, window_bounds = array<i64: 1, 8, 272>}]} {
    %c0 = arith.constant 0 : index
    %c0_0 = arith.constant 0 : index
    %c0_1 = arith.constant 0 : index
    %c0_2 = arith.constant 0 : index
    %0 = vector.load %arg1[%c0, %c0_0, %c0_1, %c0_2] : memref<1x4x4x384xbf16, #tpu.memory_space<vmem>>, vector<1x1x4x384xbf16>
    %1 = vector.shape_cast %0 : vector<1x1x4x384xbf16> to vector<4x384xbf16>
    %c0_3 = arith.constant 0 : index
    %c1 = arith.constant 1 : index
    %c0_4 = arith.constant 0 : index
    %c0_5 = arith.constant 0 : index
    %2 = vector.load %arg1[%c0_3, %c1, %c0_4, %c0_5] : memref<1x4x4x384xbf16, #tpu.memory_space<vmem>>, vector<1x1x4x384xbf16>
    %3 = vector.shape_cast %2 : vector<1x1x4x384xbf16> to vector<4x384xbf16>
    %c0_6 = arith.constant 0 : index
    %c2 = arith.constant 2 : index
    %c0_7 = arith.constant 0 : index
    %c0_8 = arith.constant 0 : index
    %4 = vector.load %arg1[%c0_6, %c2, %c0_7, %c0_8] : memref<1x4x4x384xbf16, #tpu.memory_space<vmem>>, vector<1x1x4x384xbf16>
    %5 = vector.shape_cast %4 : vector<1x1x4x384xbf16> to vector<4x384xbf16>
    %c0_9 = arith.constant 0 : index
    %c3 = arith.constant 3 : index
    %c0_10 = arith.constant 0 : index
    %c0_11 = arith.constant 0 : index
    %6 = vector.load %arg1[%c0_9, %c3, %c0_10, %c0_11] : memref<1x4x4x384xbf16, #tpu.memory_space<vmem>>, vector<1x1x4x384xbf16>
    %7 = vector.shape_cast %6 : vector<1x1x4x384xbf16> to vector<4x384xbf16>
    %8 = vector.extract_strided_slice %1 {offsets = [0, 0], sizes = [4, 272], strides = [1, 1]} : vector<4x384xbf16> to vector<4x272xbf16>
    %c0_12 = arith.constant 0 : index
    %c0_13 = arith.constant 0 : index
    %c0_14 = arith.constant 0 : index
    %c0_15 = arith.constant 0 : index
    %9 = vector.load %arg2[%c0_12, %c0_13, %c0_14, %c0_15] : memref<3x3x8x4xbf16, #tpu.memory_space<vmem>>, vector<1x1x8x4xbf16>
    %10 = vector.shape_cast %9 : vector<1x1x8x4xbf16> to vector<8x4xbf16>
    %cst = arith.constant dense<0.000000e+00> : vector<8x272xf32>
    %11 = tpu.matmul %10, %8, %cst {dimension_numbers = #tpu.dot_dimension_numbers<[1], [0], [0], [1], [0, 0, 1, 1], [], []>} : vector<8x4xbf16>, vector<4x272xbf16>, vector<8x272xf32> -> vector<8x272xf32>
    %12 = vector.extract_strided_slice %3 {offsets = [0, 0], sizes = [4, 272], strides = [1, 1]} : vector<4x384xbf16> to vector<4x272xbf16>
    %c0_16 = arith.constant 0 : index
    %c1_17 = arith.constant 1 : index
    %c0_18 = arith.constant 0 : index
    %c0_19 = arith.constant 0 : index
    %13 = vector.load %arg2[%c0_16, %c1_17, %c0_18, %c0_19] : memref<3x3x8x4xbf16, #tpu.memory_space<vmem>>, vector<1x1x8x4xbf16>
    %14 = vector.shape_cast %13 : vector<1x1x8x4xbf16> to vector<8x4xbf16>
    %cst_20 = arith.constant dense<0.000000e+00> : vector<8x272xf32>
    %15 = tpu.matmul %14, %12, %cst_20 {dimension_numbers = #tpu.dot_dimension_numbers<[1], [0], [0], [1], [0, 0, 1, 1], [], []>} : vector<8x4xbf16>, vector<4x272xbf16>, vector<8x272xf32> -> vector<8x272xf32>
    %16 = arith.addf %11, %15 : vector<8x272xf32>
    %17 = vector.extract_strided_slice %1 {offsets = [0, 1], sizes = [4, 272], strides = [1, 1]} : vector<4x384xbf16> to vector<4x272xbf16>
    %c0_21 = arith.constant 0 : index
    %c2_22 = arith.constant 2 : index
    %c0_23 = arith.constant 0 : index
    %c0_24 = arith.constant 0 : index
    %18 = vector.load %arg2[%c0_21, %c2_22, %c0_23, %c0_24] : memref<3x3x8x4xbf16, #tpu.memory_space<vmem>>, vector<1x1x8x4xbf16>
    %19 = vector.shape_cast %18 : vector<1x1x8x4xbf16> to vector<8x4xbf16>
    %cst_25 = arith.constant dense<0.000000e+00> : vector<8x272xf32>
    %20 = tpu.matmul %19, %17, %cst_25 {dimension_numbers = #tpu.dot_dimension_numbers<[1], [0], [0], [1], [0, 0, 1, 1], [], []>} : vector<8x4xbf16>, vector<4x272xbf16>, vector<8x272xf32> -> vector<8x272xf32>
    %21 = arith.addf %16, %20 : vector<8x272xf32>
    %22 = vector.extract_strided_slice %5 {offsets = [0, 0], sizes = [4, 272], strides = [1, 1]} : vector<4x384xbf16> to vector<4x272xbf16>
    %c1_26 = arith.constant 1 : index
    %c0_27 = arith.constant 0 : index
    %c0_28 = arith.constant 0 : index
    %c0_29 = arith.constant 0 : index
    %23 = vector.load %arg2[%c1_26, %c0_27, %c0_28, %c0_29] : memref<3x3x8x4xbf16, #tpu.memory_space<vmem>>, vector<1x1x8x4xbf16>
    %24 = vector.shape_cast %23 : vector<1x1x8x4xbf16> to vector<8x4xbf16>
    %cst_30 = arith.constant dense<0.000000e+00> : vector<8x272xf32>
    %25 = tpu.matmul %24, %22, %cst_30 {dimension_numbers = #tpu.dot_dimension_numbers<[1], [0], [0], [1], [0, 0, 1, 1], [], []>} : vector<8x4xbf16>, vector<4x272xbf16>, vector<8x272xf32> -> vector<8x272xf32>
    %26 = arith.addf %21, %25 : vector<8x272xf32>
    %27 = vector.extract_strided_slice %7 {offsets = [0, 0], sizes = [4, 272], strides = [1, 1]} : vector<4x384xbf16> to vector<4x272xbf16>
    %c1_31 = arith.constant 1 : index
    %c1_32 = arith.constant 1 : index
    %c0_33 = arith.constant 0 : index
    %c0_34 = arith.constant 0 : index
    %28 = vector.load %arg2[%c1_31, %c1_32, %c0_33, %c0_34] : memref<3x3x8x4xbf16, #tpu.memory_space<vmem>>, vector<1x1x8x4xbf16>
    %29 = vector.shape_cast %28 : vector<1x1x8x4xbf16> to vector<8x4xbf16>
    %cst_35 = arith.constant dense<0.000000e+00> : vector<8x272xf32>
    %30 = tpu.matmul %29, %27, %cst_35 {dimension_numbers = #tpu.dot_dimension_numbers<[1], [0], [0], [1], [0, 0, 1, 1], [], []>} : vector<8x4xbf16>, vector<4x272xbf16>, vector<8x272xf32> -> vector<8x272xf32>
    %31 = arith.addf %26, %30 : vector<8x272xf32>
    %32 = vector.extract_strided_slice %5 {offsets = [0, 1], sizes = [4, 272], strides = [1, 1]} : vector<4x384xbf16> to vector<4x272xbf16>
    %c1_36 = arith.constant 1 : index
    %c2_37 = arith.constant 2 : index
    %c0_38 = arith.constant 0 : index
    %c0_39 = arith.constant 0 : index
    %33 = vector.load %arg2[%c1_36, %c2_37, %c0_38, %c0_39] : memref<3x3x8x4xbf16, #tpu.memory_space<vmem>>, vector<1x1x8x4xbf16>
    %34 = vector.shape_cast %33 : vector<1x1x8x4xbf16> to vector<8x4xbf16>
    %cst_40 = arith.constant dense<0.000000e+00> : vector<8x272xf32>
    %35 = tpu.matmul %34, %32, %cst_40 {dimension_numbers = #tpu.dot_dimension_numbers<[1], [0], [0], [1], [0, 0, 1, 1], [], []>} : vector<8x4xbf16>, vector<4x272xbf16>, vector<8x272xf32> -> vector<8x272xf32>
    %36 = arith.addf %31, %35 : vector<8x272xf32>
    %37 = vector.extract_strided_slice %1 {offsets = [0, 17], sizes = [4, 272], strides = [1, 1]} : vector<4x384xbf16> to vector<4x272xbf16>
    %c2_41 = arith.constant 2 : index
    %c0_42 = arith.constant 0 : index
    %c0_43 = arith.constant 0 : index
    %c0_44 = arith.constant 0 : index
    %38 = vector.load %arg2[%c2_41, %c0_42, %c0_43, %c0_44] : memref<3x3x8x4xbf16, #tpu.memory_space<vmem>>, vector<1x1x8x4xbf16>
    %39 = vector.shape_cast %38 : vector<1x1x8x4xbf16> to vector<8x4xbf16>
    %cst_45 = arith.constant dense<0.000000e+00> : vector<8x272xf32>
    %40 = tpu.matmul %39, %37, %cst_45 {dimension_numbers = #tpu.dot_dimension_numbers<[1], [0], [0], [1], [0, 0, 1, 1], [], []>} : vector<8x4xbf16>, vector<4x272xbf16>, vector<8x272xf32> -> vector<8x272xf32>
    %41 = arith.addf %36, %40 : vector<8x272xf32>
    %42 = vector.extract_strided_slice %3 {offsets = [0, 17], sizes = [4, 272], strides = [1, 1]} : vector<4x384xbf16> to vector<4x272xbf16>
    %c2_46 = arith.constant 2 : index
    %c1_47 = arith.constant 1 : index
    %c0_48 = arith.constant 0 : index
    %c0_49 = arith.constant 0 : index
    %43 = vector.load %arg2[%c2_46, %c1_47, %c0_48, %c0_49] : memref<3x3x8x4xbf16, #tpu.memory_space<vmem>>, vector<1x1x8x4xbf16>
    %44 = vector.shape_cast %43 : vector<1x1x8x4xbf16> to vector<8x4xbf16>
    %cst_50 = arith.constant dense<0.000000e+00> : vector<8x272xf32>
    %45 = tpu.matmul %44, %42, %cst_50 {dimension_numbers = #tpu.dot_dimension_numbers<[1], [0], [0], [1], [0, 0, 1, 1], [], []>} : vector<8x4xbf16>, vector<4x272xbf16>, vector<8x272xf32> -> vector<8x272xf32>
    %46 = arith.addf %41, %45 : vector<8x272xf32>
    %47 = vector.extract_strided_slice %1 {offsets = [0, 18], sizes = [4, 272], strides = [1, 1]} : vector<4x384xbf16> to vector<4x272xbf16>
    %c2_51 = arith.constant 2 : index
    %c2_52 = arith.constant 2 : index
    %c0_53 = arith.constant 0 : index
    %c0_54 = arith.constant 0 : index
    %48 = vector.load %arg2[%c2_51, %c2_52, %c0_53, %c0_54] : memref<3x3x8x4xbf16, #tpu.memory_space<vmem>>, vector<1x1x8x4xbf16>
    %49 = vector.shape_cast %48 : vector<1x1x8x4xbf16> to vector<8x4xbf16>
    %cst_55 = arith.constant dense<0.000000e+00> : vector<8x272xf32>
    %50 = tpu.matmul %49, %47, %cst_55 {dimension_numbers = #tpu.dot_dimension_numbers<[1], [0], [0], [1], [0, 0, 1, 1], [], []>} : vector<8x4xbf16>, vector<4x272xbf16>, vector<8x272xf32> -> vector<8x272xf32>
    %51 = arith.addf %46, %50 : vector<8x272xf32>
    %c0_56 = arith.constant 0 : index
    %c0_57 = arith.constant 0 : index
    %52 = vector.load %arg3[%c0_56, %c0_57] : memref<8x1xf32, #tpu.memory_space<vmem>>, vector<8x1xf32>
    %53 = vector.broadcast %52 : vector<8x1xf32> to vector<8x272xf32>
    %54 = arith.addf %51, %53 : vector<8x272xf32>
    %cst_58 = arith.constant 0.000000e+00 : f32
    %55 = vector.broadcast %cst_58 : f32 to vector<8x272xf32>
    %56 = arith.maximumf %54, %55 : vector<8x272xf32>
    %c0_59 = arith.constant 0 : index
    %c0_60 = arith.constant 0 : index
    %c0_61 = arith.constant 0 : index
    %57 = vector.load %arg4[%c0_59, %c0_60, %c0_61] : memref<1x8x272xf32, #tpu.memory_space<vmem>>, vector<1x8x272xf32>
    %58 = vector.shape_cast %57 : vector<1x8x272xf32> to vector<8x272xf32>
    %59 = vector.shape_cast %56 : vector<8x272xf32> to vector<1x8x272xf32>
    tpu.vector_store %arg4[%c0_59, %c0_60, %c0_61], %59 {strides = array<i32>} : memref<1x8x272xf32, #tpu.memory_space<vmem>>, vector<1x8x272xf32>,
    return
  }
  func.func @transform_0(%arg0: i32) -> (i32, i32, i32, i32) {
    %c0_i32 = arith.constant 0 : i32
    %c0_i32_0 = arith.constant 0 : i32
    %c0_i32_1 = arith.constant 0 : i32
    %c0_i32_2 = arith.constant 0 : i32
    return %arg0, %c0_i32, %c0_i32_0, %c0_i32_1 : i32, i32, i32, i32
  }
  func.func @transform_1(%arg0: i32) -> (i32, i32, i32, i32) {
    %c0_i32 = arith.constant 0 : i32
    %c0_i32_0 = arith.constant 0 : i32
    %c0_i32_1 = arith.constant 0 : i32
    %c0_i32_2 = arith.constant 0 : i32
    %c0_i32_3 = arith.constant 0 : i32
    return %c0_i32, %c0_i32_0, %c0_i32_1, %c0_i32_2 : i32, i32, i32, i32
  }
  func.func @transform_2(%arg0: i32) -> (i32, i32) {
    %c0_i32 = arith.constant 0 : i32
    %c0_i32_0 = arith.constant 0 : i32
    %c0_i32_1 = arith.constant 0 : i32
    return %c0_i32, %c0_i32_0 : i32, i32
  }
  func.func @transform_3(%arg0: i32) -> (i32, i32, i32) {
    %c0_i32 = arith.constant 0 : i32
    %c0_i32_0 = arith.constant 0 : i32
    %c0_i32_1 = arith.constant 0 : i32
    return %arg0, %c0_i32, %c0_i32_0 : i32, i32, i32
  }
}

module attributes {stable_mosaic.version = 11 : i64} {
  func.func @kernel(%arg0: i32, %arg1: memref<1x4x8x128xbf16, #tpu.memory_space<vmem>>, %arg2: memref<3x3x16x8xbf16, #tpu.memory_space<vmem>>, %arg3: memref<16x1xf32, #tpu.memory_space<vmem>>, %arg4: memref<1x16x72xf32, #tpu.memory_space<vmem>>) attributes {dimension_semantics = [#tpu.dimension_semantics<parallel>], iteration_bounds = array<i64: 2>, scalar_prefetch = 0 : i64, scratch_operands = 0 : i64, tpu.core_type = #tpu.core_type<tc>, window_params = [{transform_indices = @transform_0, window_bounds = array<i64: 1, 4, 8, 128>}, {pipeline_mode = #tpu.pipeline_mode<synchronous>, transform_indices = @transform_1, window_bounds = array<i64: 3, 3, 16, 8>}, {pipeline_mode = #tpu.pipeline_mode<synchronous>, transform_indices = @transform_2, window_bounds = array<i64: 16, 1>}, {transform_indices = @transform_3, window_bounds = array<i64: 1, 16, 72>}]} {
    %c0 = arith.constant 0 : index
    %c0_0 = arith.constant 0 : index
    %c0_1 = arith.constant 0 : index
    %c0_2 = arith.constant 0 : index
    %0 = vector.load %arg1[%c0, %c0_0, %c0_1, %c0_2] : memref<1x4x8x128xbf16, #tpu.memory_space<vmem>>, vector<1x1x8x128xbf16>
    %1 = vector.shape_cast %0 : vector<1x1x8x128xbf16> to vector<8x128xbf16>
    %c0_3 = arith.constant 0 : index
    %c1 = arith.constant 1 : index
    %c0_4 = arith.constant 0 : index
    %c0_5 = arith.constant 0 : index
    %2 = vector.load %arg1[%c0_3, %c1, %c0_4, %c0_5] : memref<1x4x8x128xbf16, #tpu.memory_space<vmem>>, vector<1x1x8x128xbf16>
    %3 = vector.shape_cast %2 : vector<1x1x8x128xbf16> to vector<8x128xbf16>
    %c0_6 = arith.constant 0 : index
    %c2 = arith.constant 2 : index
    %c0_7 = arith.constant 0 : index
    %c0_8 = arith.constant 0 : index
    %4 = vector.load %arg1[%c0_6, %c2, %c0_7, %c0_8] : memref<1x4x8x128xbf16, #tpu.memory_space<vmem>>, vector<1x1x8x128xbf16>
    %5 = vector.shape_cast %4 : vector<1x1x8x128xbf16> to vector<8x128xbf16>
    %c0_9 = arith.constant 0 : index
    %c3 = arith.constant 3 : index
    %c0_10 = arith.constant 0 : index
    %c0_11 = arith.constant 0 : index
    %6 = vector.load %arg1[%c0_9, %c3, %c0_10, %c0_11] : memref<1x4x8x128xbf16, #tpu.memory_space<vmem>>, vector<1x1x8x128xbf16>
    %7 = vector.shape_cast %6 : vector<1x1x8x128xbf16> to vector<8x128xbf16>
    %8 = vector.extract_strided_slice %1 {offsets = [0, 0], sizes = [8, 72], strides = [1, 1]} : vector<8x128xbf16> to vector<8x72xbf16>
    %c0_12 = arith.constant 0 : index
    %c0_13 = arith.constant 0 : index
    %c0_14 = arith.constant 0 : index
    %c0_15 = arith.constant 0 : index
    %9 = vector.load %arg2[%c0_12, %c0_13, %c0_14, %c0_15] : memref<3x3x16x8xbf16, #tpu.memory_space<vmem>>, vector<1x1x16x8xbf16>
    %10 = vector.shape_cast %9 : vector<1x1x16x8xbf16> to vector<16x8xbf16>
    %cst = arith.constant dense<0.000000e+00> : vector<16x72xf32>
    %11 = tpu.matmul %10, %8, %cst {dimension_numbers = #tpu.dot_dimension_numbers<[1], [0], [0], [1], [0, 0, 1, 1], [], []>} : vector<16x8xbf16>, vector<8x72xbf16>, vector<16x72xf32> -> vector<16x72xf32>
    %12 = vector.extract_strided_slice %3 {offsets = [0, 0], sizes = [8, 72], strides = [1, 1]} : vector<8x128xbf16> to vector<8x72xbf16>
    %c0_16 = arith.constant 0 : index
    %c1_17 = arith.constant 1 : index
    %c0_18 = arith.constant 0 : index
    %c0_19 = arith.constant 0 : index
    %13 = vector.load %arg2[%c0_16, %c1_17, %c0_18, %c0_19] : memref<3x3x16x8xbf16, #tpu.memory_space<vmem>>, vector<1x1x16x8xbf16>
    %14 = vector.shape_cast %13 : vector<1x1x16x8xbf16> to vector<16x8xbf16>
    %cst_20 = arith.constant dense<0.000000e+00> : vector<16x72xf32>
    %15 = tpu.matmul %14, %12, %cst_20 {dimension_numbers = #tpu.dot_dimension_numbers<[1], [0], [0], [1], [0, 0, 1, 1], [], []>} : vector<16x8xbf16>, vector<8x72xbf16>, vector<16x72xf32> -> vector<16x72xf32>
    %16 = arith.addf %11, %15 : vector<16x72xf32>
    %17 = vector.extract_strided_slice %1 {offsets = [0, 1], sizes = [8, 72], strides = [1, 1]} : vector<8x128xbf16> to vector<8x72xbf16>
    %c0_21 = arith.constant 0 : index
    %c2_22 = arith.constant 2 : index
    %c0_23 = arith.constant 0 : index
    %c0_24 = arith.constant 0 : index
    %18 = vector.load %arg2[%c0_21, %c2_22, %c0_23, %c0_24] : memref<3x3x16x8xbf16, #tpu.memory_space<vmem>>, vector<1x1x16x8xbf16>
    %19 = vector.shape_cast %18 : vector<1x1x16x8xbf16> to vector<16x8xbf16>
    %cst_25 = arith.constant dense<0.000000e+00> : vector<16x72xf32>
    %20 = tpu.matmul %19, %17, %cst_25 {dimension_numbers = #tpu.dot_dimension_numbers<[1], [0], [0], [1], [0, 0, 1, 1], [], []>} : vector<16x8xbf16>, vector<8x72xbf16>, vector<16x72xf32> -> vector<16x72xf32>
    %21 = arith.addf %16, %20 : vector<16x72xf32>
    %22 = vector.extract_strided_slice %5 {offsets = [0, 0], sizes = [8, 72], strides = [1, 1]} : vector<8x128xbf16> to vector<8x72xbf16>
    %c1_26 = arith.constant 1 : index
    %c0_27 = arith.constant 0 : index
    %c0_28 = arith.constant 0 : index
    %c0_29 = arith.constant 0 : index
    %23 = vector.load %arg2[%c1_26, %c0_27, %c0_28, %c0_29] : memref<3x3x16x8xbf16, #tpu.memory_space<vmem>>, vector<1x1x16x8xbf16>
    %24 = vector.shape_cast %23 : vector<1x1x16x8xbf16> to vector<16x8xbf16>
    %cst_30 = arith.constant dense<0.000000e+00> : vector<16x72xf32>
    %25 = tpu.matmul %24, %22, %cst_30 {dimension_numbers = #tpu.dot_dimension_numbers<[1], [0], [0], [1], [0, 0, 1, 1], [], []>} : vector<16x8xbf16>, vector<8x72xbf16>, vector<16x72xf32> -> vector<16x72xf32>
    %26 = arith.addf %21, %25 : vector<16x72xf32>
    %27 = vector.extract_strided_slice %7 {offsets = [0, 0], sizes = [8, 72], strides = [1, 1]} : vector<8x128xbf16> to vector<8x72xbf16>
    %c1_31 = arith.constant 1 : index
    %c1_32 = arith.constant 1 : index
    %c0_33 = arith.constant 0 : index
    %c0_34 = arith.constant 0 : index
    %28 = vector.load %arg2[%c1_31, %c1_32, %c0_33, %c0_34] : memref<3x3x16x8xbf16, #tpu.memory_space<vmem>>, vector<1x1x16x8xbf16>
    %29 = vector.shape_cast %28 : vector<1x1x16x8xbf16> to vector<16x8xbf16>
    %cst_35 = arith.constant dense<0.000000e+00> : vector<16x72xf32>
    %30 = tpu.matmul %29, %27, %cst_35 {dimension_numbers = #tpu.dot_dimension_numbers<[1], [0], [0], [1], [0, 0, 1, 1], [], []>} : vector<16x8xbf16>, vector<8x72xbf16>, vector<16x72xf32> -> vector<16x72xf32>
    %31 = arith.addf %26, %30 : vector<16x72xf32>
    %32 = vector.extract_strided_slice %5 {offsets = [0, 1], sizes = [8, 72], strides = [1, 1]} : vector<8x128xbf16> to vector<8x72xbf16>
    %c1_36 = arith.constant 1 : index
    %c2_37 = arith.constant 2 : index
    %c0_38 = arith.constant 0 : index
    %c0_39 = arith.constant 0 : index
    %33 = vector.load %arg2[%c1_36, %c2_37, %c0_38, %c0_39] : memref<3x3x16x8xbf16, #tpu.memory_space<vmem>>, vector<1x1x16x8xbf16>
    %34 = vector.shape_cast %33 : vector<1x1x16x8xbf16> to vector<16x8xbf16>
    %cst_40 = arith.constant dense<0.000000e+00> : vector<16x72xf32>
    %35 = tpu.matmul %34, %32, %cst_40 {dimension_numbers = #tpu.dot_dimension_numbers<[1], [0], [0], [1], [0, 0, 1, 1], [], []>} : vector<16x8xbf16>, vector<8x72xbf16>, vector<16x72xf32> -> vector<16x72xf32>
    %36 = arith.addf %31, %35 : vector<16x72xf32>
    %37 = vector.extract_strided_slice %1 {offsets = [0, 9], sizes = [8, 72], strides = [1, 1]} : vector<8x128xbf16> to vector<8x72xbf16>
    %c2_41 = arith.constant 2 : index
    %c0_42 = arith.constant 0 : index
    %c0_43 = arith.constant 0 : index
    %c0_44 = arith.constant 0 : index
    %38 = vector.load %arg2[%c2_41, %c0_42, %c0_43, %c0_44] : memref<3x3x16x8xbf16, #tpu.memory_space<vmem>>, vector<1x1x16x8xbf16>
    %39 = vector.shape_cast %38 : vector<1x1x16x8xbf16> to vector<16x8xbf16>
    %cst_45 = arith.constant dense<0.000000e+00> : vector<16x72xf32>
    %40 = tpu.matmul %39, %37, %cst_45 {dimension_numbers = #tpu.dot_dimension_numbers<[1], [0], [0], [1], [0, 0, 1, 1], [], []>} : vector<16x8xbf16>, vector<8x72xbf16>, vector<16x72xf32> -> vector<16x72xf32>
    %41 = arith.addf %36, %40 : vector<16x72xf32>
    %42 = vector.extract_strided_slice %3 {offsets = [0, 9], sizes = [8, 72], strides = [1, 1]} : vector<8x128xbf16> to vector<8x72xbf16>
    %c2_46 = arith.constant 2 : index
    %c1_47 = arith.constant 1 : index
    %c0_48 = arith.constant 0 : index
    %c0_49 = arith.constant 0 : index
    %43 = vector.load %arg2[%c2_46, %c1_47, %c0_48, %c0_49] : memref<3x3x16x8xbf16, #tpu.memory_space<vmem>>, vector<1x1x16x8xbf16>
    %44 = vector.shape_cast %43 : vector<1x1x16x8xbf16> to vector<16x8xbf16>
    %cst_50 = arith.constant dense<0.000000e+00> : vector<16x72xf32>
    %45 = tpu.matmul %44, %42, %cst_50 {dimension_numbers = #tpu.dot_dimension_numbers<[1], [0], [0], [1], [0, 0, 1, 1], [], []>} : vector<16x8xbf16>, vector<8x72xbf16>, vector<16x72xf32> -> vector<16x72xf32>
    %46 = arith.addf %41, %45 : vector<16x72xf32>
    %47 = vector.extract_strided_slice %1 {offsets = [0, 10], sizes = [8, 72], strides = [1, 1]} : vector<8x128xbf16> to vector<8x72xbf16>
    %c2_51 = arith.constant 2 : index
    %c2_52 = arith.constant 2 : index
    %c0_53 = arith.constant 0 : index
    %c0_54 = arith.constant 0 : index
    %48 = vector.load %arg2[%c2_51, %c2_52, %c0_53, %c0_54] : memref<3x3x16x8xbf16, #tpu.memory_space<vmem>>, vector<1x1x16x8xbf16>
    %49 = vector.shape_cast %48 : vector<1x1x16x8xbf16> to vector<16x8xbf16>
    %cst_55 = arith.constant dense<0.000000e+00> : vector<16x72xf32>
    %50 = tpu.matmul %49, %47, %cst_55 {dimension_numbers = #tpu.dot_dimension_numbers<[1], [0], [0], [1], [0, 0, 1, 1], [], []>} : vector<16x8xbf16>, vector<8x72xbf16>, vector<16x72xf32> -> vector<16x72xf32>
    %51 = arith.addf %46, %50 : vector<16x72xf32>
    %c0_56 = arith.constant 0 : index
    %c0_57 = arith.constant 0 : index
    %52 = vector.load %arg3[%c0_56, %c0_57] : memref<16x1xf32, #tpu.memory_space<vmem>>, vector<16x1xf32>
    %53 = vector.broadcast %52 : vector<16x1xf32> to vector<16x72xf32>
    %54 = arith.addf %51, %53 : vector<16x72xf32>
    %cst_58 = arith.constant 0.000000e+00 : f32
    %55 = vector.broadcast %cst_58 : f32 to vector<16x72xf32>
    %56 = arith.maximumf %54, %55 : vector<16x72xf32>
    %c0_59 = arith.constant 0 : index
    %c0_60 = arith.constant 0 : index
    %c0_61 = arith.constant 0 : index
    %57 = vector.load %arg4[%c0_59, %c0_60, %c0_61] : memref<1x16x72xf32, #tpu.memory_space<vmem>>, vector<1x16x72xf32>
    %58 = vector.shape_cast %57 : vector<1x16x72xf32> to vector<16x72xf32>
    %59 = vector.shape_cast %56 : vector<16x72xf32> to vector<1x16x72xf32>
    tpu.vector_store %arg4[%c0_59, %c0_60, %c0_61], %59 {strides = array<i32>} : memref<1x16x72xf32, #tpu.memory_space<vmem>>, vector<1x16x72xf32>,
    return
  }
  func.func @transform_0(%arg0: i32) -> (i32, i32, i32, i32) {
    %c0_i32 = arith.constant 0 : i32
    %c0_i32_0 = arith.constant 0 : i32
    %c0_i32_1 = arith.constant 0 : i32
    %c0_i32_2 = arith.constant 0 : i32
    return %arg0, %c0_i32, %c0_i32_0, %c0_i32_1 : i32, i32, i32, i32
  }
  func.func @transform_1(%arg0: i32) -> (i32, i32, i32, i32) {
    %c0_i32 = arith.constant 0 : i32
    %c0_i32_0 = arith.constant 0 : i32
    %c0_i32_1 = arith.constant 0 : i32
    %c0_i32_2 = arith.constant 0 : i32
    %c0_i32_3 = arith.constant 0 : i32
    return %c0_i32, %c0_i32_0, %c0_i32_1, %c0_i32_2 : i32, i32, i32, i32
  }
  func.func @transform_2(%arg0: i32) -> (i32, i32) {
    %c0_i32 = arith.constant 0 : i32
    %c0_i32_0 = arith.constant 0 : i32
    %c0_i32_1 = arith.constant 0 : i32
    return %c0_i32, %c0_i32_0 : i32, i32
  }
  func.func @transform_3(%arg0: i32) -> (i32, i32, i32) {
    %c0_i32 = arith.constant 0 : i32
    %c0_i32_0 = arith.constant 0 : i32
    %c0_i32_1 = arith.constant 0 : i32
    return %arg0, %c0_i32, %c0_i32_0 : i32, i32, i32
  }
}

</mosaic_0001>

<bundles_post_ra>
// kernel: _lambda_.2
= control target key start
LH: loop header
LB: loop body
LE: loop exit
PB: predicated region body
PF: predicated region fallthrough
CT: control target
= control target key end

     0   :  { %s1414_s12 = smov 0   ;;  %s1579_s0 = inlined_call_operand.vmem [shape: bf16[2,4,4,384], index: 0, kind: input, shape index: {}]   ;;  %s1580_s1 = inlined_call_operand.vmem [shape: bf16[3,3,8,4], index: 1, kind: input, shape index: {}]   ;;  %s1581_s2 = inlined_call_operand.vmem [shape: f32[8,1], index: 2, kind: input, shape index: {}]   ;;  %s1582_s3 = inlined_call_operand.vmem [shape: f32[2,8,272], index: 3, kind: output, shape index: {}]  }
   0x1 LB: > { %s1238_s13 = sadd.s32 4294967295, %s1385_s12   ;;  %p1242_p0 = scmp.ge.s32.totalorder %s1385_s12, 1  ;;  %s1385_s12 = sphi %s1414_s12, %s13_s12  }
   0x2   : > { %p137_p1 = scmp.lt.s32.totalorder %s1385_s12, 3 }
   0x4   : > { %p138_p2 = pnand %p1242_p0, %p137_p1 }
   0x5   : > { %p161_p3 = scmp.lt.s32.totalorder (!%p138_p2), %s1238_s13, 1  ;;  %v187_v0 = vlaneseq (!%p138_p2)  ;;  %v1387_v1 = vmov (!%p138_p2), 1983009808   ;;  %v1388_v3 = vmov (!%p138_p2), 0.0   ;;  %v1389_v5 = vmov (!%p138_p2), 0   ;;  %s1391_s18 = smov (!%p138_p2), 127  }
   0x6   : > { %141 = sbr.rel (%p138_p2) target bundleno = 412 (0x19c), region = 32  ;;  %v185_v2 = vunpack.c.l.s4 (!%p138_p2), %v1387_v1  ;;  %1303 = vmatprep.subr.bf16.mxu1 (!%p138_p2), %v1388_v3  ;;  %245 = vmatprep.mubr.bf16.mxu0 (!%p138_p2), %v1389_v5  ;;  %vm1390_vm0 = vmmov (!%p138_p2), 0   ;;  %vm203_vm1 = vcmask (!%p138_p2), 1041408   ;;  %v1248_v26 = vld [vmem:[%s1580_s1 + $0x4] sm:$0xf] (!%p138_p2)  ;;  %vm199_vm2 = vcmask (!%p138_p2), 31744  }
   0x7   : > { %v188_v4 = vshrl.u32 (!%p138_p2), %v187_v0, 7  ;;  %1373 = vset.pattern.permute.xlu1 (!%p138_p2), %v1389_v5  ;;  %1305 = vmatprep.mubr.msk.bf16.mxu1 (!%p138_p2), %vm1390_vm0, %v1388_v3  ;;  %s1392_s21 = smov (!%p138_p2), 111   ;;  %v179_v32 = vld [vmem:[%s1580_s1] sm:$0xf] (!%p138_p2)  ;;  %s1393_s24 = smov (!%p138_p2), 110   ;;  %vm412_vm3 = vcmask (!%p138_p2), 1039360  }
   0x8   : > { %v186_v6 = vunpack.c.0.s8 (!%p138_p2), %v185_v2  ;;  %1374 = vset.pattern.permute.xlu0 (!%p138_p2), %v1389_v5  ;;  %v1167_v33 = vld [vmem:[%s1581_s2] sm:$0xff] (!%p138_p2)  ;;  %v1255_v38 = vld [vmem:[%s1580_s1 + $0x8] sm:$0xf] (!%p138_p2)  ;;  %v1259_v47 = vld [vmem:[%s1580_s1 + $0xc] sm:$0xf] (!%p138_p2)  ;;  %vm855_vm4 = vcmask (!%p138_p2), 908288  }
   0x9   : > { %v1263_v54 = vld [vmem:[%s1580_s1 + $0x10] sm:$0xf] (!%p138_p2)  ;;  %v1267_v62 = vld [vmem:[%s1580_s1 + $0x14] sm:$0xf] (!%p138_p2)  ;;  %vm1068_vm5 = vcmask (!%p138_p2), 900096   ;;  %vm1181_vm6 = vcmask (!%p138_p2), 130048  }
   0xa   : > { %v189_v7 = vsub.s32 (!%p138_p2), %v186_v6, %v188_v4 }
   0xd   : > { %s1584_s13 = smov (!%p161_p3, %s1238_s13), 1 }
   0xe   : > { %s1357_s14 = smul.u32 24, %s1584_s13 }
  0x10   : > { %s165_s17 = scalar_lea.vmem %s1579_s0, %s1357_s14  ;;  %s170_s19 = scalar_lea.vmem %s1582_s3, %s1357_s14 }
  0x11   : > { %v172_v8 = vld [vmem:[%s165_s17] sm:$0x3f]  ;;  %v1245_v9 = vld [vmem:[%s165_s17 + $0x6] sm:$0x3f]  ;;  %v1246_v12 = vld [vmem:[%s165_s17 + $0xc] sm:$0x3f] }
  0x12   : > { %v302_v10 = vrot.slane %v172_v8, %v189_v7  ;;  %v295_v11 = vcombine.high %v172_v8, %v172_v8  ;;  %v190_v13 = vrot.slane %v1245_v9, %v189_v7  ;;  %v183_v14 = vcombine.high %v1245_v9, %v1245_v9  ;;  %v1247_v17 = vld [vmem:[%s165_s17 + $0x12] sm:$0x3f] }
  0x13   : > { %v1439_v21 = vrot.slane %v1246_v12, %v189_v7  ;;  %v514_v22 = vcombine.high %v1246_v12, %v1246_v12  ;;  %v629_v23 = vcombine.high %v1247_v17, %v1247_v17  ;;  %v1451_v28 = vrot.slane %v1247_v17, %v189_v7 }
  0x14   : > { %406 = vrot.lane.b32.xlu0 %v302_v10, %s1391_s18  ;;  %v309_v15 = vrot.slane %v295_v11, %v189_v7  ;;  %v310_v16 = vcombine.high %v302_v10, %v302_v10  ;;  %v198_v18 = vcombine.high %v190_v13, %v190_v13  ;;  %v197_v19 = vrot.slane %v183_v14, %v189_v7  ;;  %v1275_v14 = vld [vmem:[%s1580_s1 + $0x1c] sm:$0xf] }
  0x15   : > { %v205_v20 = vsel %vm203_vm1, %v190_v13, 0  ;;  %v529_v25 = vcombine.high %v1439_v21, %v1439_v21  ;;  %v1449_v27 = vrot.slane %v629_v23, %v189_v7  ;;  %v528_v29 = vrot.slane %v514_v22, %v189_v7  ;;  %v1271_v7 = vld [vmem:[%s1580_s1 + $0x18] sm:$0xf] }
  0x16   : > { %410 = vrot.lane.b32.xlu1 %v309_v15, %s1391_s18  ;;  %1249 = vmatprep.subr.msk.bf16.mxu0 %vm203_vm1, %v198_v18  ;;  %v211_v24 = vsel %vm203_vm1, %v197_v19, 0  ;;  %v315_v30 = vsel %vm203_vm1, %v302_v10, 0  ;;  %v321_v31 = vsel %vm203_vm1, %v309_v15, 0  ;;  %v534_v43 = vsel %vm203_vm1, %v1439_v21, 0 }
  0x17   : > { %214 = vmatpush1.bf16.msra.mxu0 %v205_v20  ;;  %1304 = vmatpush3.bf16.msra.mxu1 %v211_v24  ;;  %v540_v41 = vsel %vm203_vm1, %v528_v29, 0  ;;  %v644_v45 = vcombine.high %v1451_v28, %v1451_v28  ;;  %v655_v48 = vsel %vm203_vm1, %v1449_v27, 0  ;;  %v649_v50 = vsel %vm203_vm1, %v1451_v28, 0 }
  0x18   : > { %408 = vrot.lane.b32.xlu0 %v310_v16, %s1391_s18  ;;  %1252 = vmatprep.subr.msk.bf16.mxu0 %vm203_vm1, %v310_v16 }
  0x19   : > { %1309 = vmatprep.subr.bf16.mxu1 %v1388_v3 }
  0x1a   : > { %743 = vrot.lane.b32.xlu1 %v1439_v21, %s1391_s18  ;;  %1250 = vmatmul.mubr.msk.bf16.vlgmr.msra.gmra.mrb[0].mxu0 %vm199_vm2, %v1248_v26 }
  0x1b   : > { %1306 = vmatmul.mubr.msk.bf16.vlgmr.msra.gmra.mrb[0].mxu1 %vm199_vm2, %v1248_v26  ;;  %324 = vmatpush1.bf16.msra.mxu0 %v315_v30 }
  0x1c   : > { %745 = vrot.lane.b32.xlu0 %v529_v25, %s1391_s18  ;;  %1310 = vmatpush3.bf16.msra.mxu1 %v321_v31 }
  0x1d   : > { %355 = vmatprep.mubr.bf16.mxu0 %v1389_v5  ;;  %1311 = vmatprep.mubr.msk.bf16.mxu1 %vm1390_vm0, %v1388_v3 }
  0x1e   : > { %747 = vrot.lane.b32.xlu1 %v528_v29, %s1391_s18  ;;  %1315 = vmatprep.subr.bf16.mxu1 %v1388_v3 }
  0x20   : > { %849 = vrot.lane.b32.xlu0 %v302_v10, %s1392_s21 }
  0x22   : > { %851 = vrot.lane.b32.xlu1 %v310_v16, %s1392_s21  ;;  %1253 = vmatmul.mubr.msk.bf16.vlgmr.msra.gmra.mrb[4].mxu0 %vm199_vm2, %v179_v32 }
  0x23   : > { %1312 = vmatmul.mubr.msk.bf16.vlgmr.msra.gmra.mrb[4].mxu1 %vm199_vm2, %v179_v32  ;;  %459 = vmatprep.mubr.bf16.mxu0 %v1389_v5 }
  0x24   : > { %853 = vrot.lane.b32.xlu0 %v309_v15, %s1392_s21  ;;  %1317 = vmatprep.mubr.msk.bf16.mxu1 %vm1390_vm0, %v1388_v3 }
  0x26   : > { %956 = vrot.lane.b32.xlu1 %v190_v13, %s1392_s21 }
  0x28   : > { %958 = vrot.lane.b32.xlu0 %v198_v18, %s1392_s21  ;;  %v1279_v18 = vld [vmem:[%s1580_s1 + $0x20] sm:$0xf] }
  0x2a   : > { %960 = vrot.lane.b32.xlu1 %v197_v19, %s1392_s21 }
  0x2c   : > { %1062 = vrot.lane.b32.xlu0 %v302_v10, %s1393_s24 }
  0x2e   : > { %1064 = vrot.lane.b32.xlu1 %v310_v16, %s1393_s24 }
  0x30   : > { %1066 = vrot.lane.b32.xlu0 %v309_v15, %s1393_s24 }
  0x32   : > { %1170 = vperm.xlu1 %1373, %v1167_v33  }
  0x86   : > { %v407_v34 = vpop.permute.xlu0 %406 }
  0x88   : > { %v411_v35 = vpop.permute.xlu1 %410 }
  0x89   : > { %v425_v36 = vsel %vm203_vm1, %v411_v35, 0 }
  0x8a   : > { %v409_v37 = vpop.permute.xlu0 %408  ;;  %1316 = vmatpush3.bf16.msra.mxu1 %v425_v36 }
  0x8b   : > { %v413_v39 = vsel %vm412_vm3, %v407_v34, %v409_v37  ;;  %v414_v40 = vsel %vm412_vm3, %v409_v37, %v411_v35  ;;  %1321 = vmatprep.subr.bf16.mxu1 %v1388_v3 }
  0x8c   : > { %v419_v42 = vsel %vm203_vm1, %v413_v39, 0  ;;  %1256 = vmatprep.subr.msk.bf16.mxu0 %vm203_vm1, %v414_v40  ;;  %v744_v44 = vpop.permute.xlu1 %743 }
  0x8d   : > { %428 = vmatpush1.bf16.msra.mxu0 %v419_v42  ;;  %1318 = vmatmul.mubr.msk.bf16.vlgmr.msra.gmra.mrb[8].mxu1 %vm199_vm2, %v1255_v38 }
  0x8e   : > { %1322 = vmatpush3.bf16.msra.mxu1 %v540_v41  ;;  %1260 = vmatprep.subr.msk.bf16.mxu0 %vm203_vm1, %v529_v25  ;;  %v746_v46 = vpop.permute.xlu0 %745 }
  0x8f   : > { %1323 = vmatprep.mubr.msk.bf16.mxu1 %vm1390_vm0, %v1388_v3  ;;  %1327 = vmatprep.subr.bf16.mxu1 %v1388_v3  ;;  %v749_v55 = vsel %vm412_vm3, %v744_v44, %v746_v46 }
  0x90   : > { %1257 = vmatmul.mubr.msk.bf16.vlgmr.msra.gmra.mrb[8].mxu0 %vm199_vm2, %v1255_v38  ;;  %v748_v49 = vpop.permute.xlu1 %747  ;;  %v755_v58 = vsel %vm203_vm1, %v749_v55, 0 }
  0x91   : > { %543 = vmatpush1.bf16.msra.mxu0 %v534_v43  ;;  %574 = vmatprep.mubr.bf16.mxu0 %v1389_v5  ;;  %v750_v52 = vsel %vm412_vm3, %v746_v46, %v748_v49  ;;  %v761_v56 = vsel %vm203_vm1, %v748_v49, 0 }
  0x92   : > { %1264 = vmatprep.subr.msk.bf16.mxu0 %vm203_vm1, %v644_v45  ;;  %v850_v51 = vpop.permute.xlu0 %849 }
  0x94   : > { %v852_v53 = vpop.permute.xlu1 %851 }
  0x95   : > { %1324 = vmatmul.mubr.msk.bf16.vlgmr.msra.gmra.mrb[12].mxu1 %vm199_vm2, %v1259_v47  ;;  %v856_v0 = vsel %vm855_vm4, %v850_v51, %v852_v53 }
  0x96   : > { %1328 = vmatpush3.bf16.msra.mxu1 %v655_v48  ;;  %1329 = vmatprep.mubr.msk.bf16.mxu1 %vm1390_vm0, %v1388_v3  ;;  %v854_v57 = vpop.permute.xlu0 %853  ;;  %v862_v2 = vsel %vm203_vm1, %v856_v0, 0 }
  0x97   : > { %1333 = vmatprep.subr.bf16.mxu1 %v1388_v3  ;;  %v857_v60 = vsel %vm855_vm4, %v852_v53, %v854_v57  ;;  %v868_v63 = vsel %vm203_vm1, %v854_v57, 0 }
  0x98   : > { %1261 = vmatmul.mubr.msk.bf16.vlgmr.msra.gmra.mrb[12].mxu0 %vm199_vm2, %v1259_v47  ;;  %v957_v59 = vpop.permute.xlu1 %956 }
  0x99   : > { %658 = vmatpush1.bf16.msra.mxu0 %v649_v50  ;;  %689 = vmatprep.mubr.bf16.mxu0 %v1389_v5 }
  0x9a   : > { %1268 = vmatprep.subr.msk.bf16.mxu0 %vm203_vm1, %v750_v52  ;;  %v959_v61 = vpop.permute.xlu0 %958 }
  0x9b   : > { %v962_v8 = vsel %vm855_vm4, %v957_v59, %v959_v61 }
  0x9c   : > { %v961_v1 = vpop.permute.xlu1 %960  ;;  %v968_v12 = vsel %vm203_vm1, %v962_v8, 0 }
  0x9d   : > { %1330 = vmatmul.mubr.msk.bf16.vlgmr.msra.gmra.mrb[16].mxu1 %vm199_vm2, %v1263_v54  ;;  %v963_v6 = vsel %vm855_vm4, %v959_v61, %v961_v1  ;;  %v974_v9 = vsel %vm203_vm1, %v961_v1, 0 }
  0x9e   : > { %1334 = vmatpush3.bf16.msra.mxu1 %v761_v56  ;;  %1335 = vmatprep.mubr.msk.bf16.mxu1 %vm1390_vm0, %v1388_v3  ;;  %v1063_v4 = vpop.permute.xlu0 %1062 }
  0x9f   : > { %1339 = vmatprep.subr.bf16.mxu1 %v1388_v3 }
  0xa0   : > { %1265 = vmatmul.mubr.msk.bf16.vlgmr.msra.gmra.mrb[16].mxu0 %vm199_vm2, %v1263_v54  ;;  %v1065_v11 = vpop.permute.xlu1 %1064 }
  0xa1   : > { %764 = vmatpush1.bf16.msra.mxu0 %v755_v58  ;;  %795 = vmatprep.mubr.bf16.mxu0 %v1389_v5  ;;  %v1069_v16 = vsel %vm1068_vm5, %v1063_v4, %v1065_v11 }
  0xa2   : > { %1272 = vmatprep.subr.msk.bf16.mxu0 %vm203_vm1, %v857_v60  ;;  %v1067_v10 = vpop.permute.xlu0 %1066  ;;  %v1075_v17 = vsel %vm203_vm1, %v1069_v16, 0 }
  0xa3   : > { %v1070_v13 = vsel %vm1068_vm5, %v1065_v11, %v1067_v10  ;;  %v1081_v15 = vsel %vm203_vm1, %v1067_v10, 0 }
  0xa5   : > { %1336 = vmatmul.mubr.msk.bf16.vlgmr.msra.gmra.mrb[20].mxu1 %vm199_vm2, %v1267_v62 }
  0xa6   : > { %1340 = vmatpush3.bf16.msra.mxu1 %v868_v63  ;;  %1341 = vmatprep.mubr.msk.bf16.mxu1 %vm1390_vm0, %v1388_v3 }
  0xa7   : > { %1345 = vmatprep.subr.bf16.mxu1 %v1388_v3 }
  0xa8   : > { %1269 = vmatmul.mubr.msk.bf16.vlgmr.msra.gmra.mrb[20].mxu0 %vm199_vm2, %v1267_v62 }
  0xa9   : > { %871 = vmatpush1.bf16.msra.mxu0 %v862_v2  ;;  %902 = vmatprep.mubr.bf16.mxu0 %v1389_v5 }
  0xaa   : > { %1276 = vmatprep.subr.msk.bf16.mxu0 %vm203_vm1, %v963_v6 }
  0xad   : > { %1342 = vmatmul.mubr.msk.bf16.vlgmr.msra.gmra.mrb[24].mxu1 %vm199_vm2, %v1271_v7 }
  0xae   : > { %1346 = vmatpush3.bf16.msra.mxu1 %v974_v9  ;;  %1347 = vmatprep.mubr.msk.bf16.mxu1 %vm1390_vm0, %v1388_v3 }
  0xaf   : > { %1351 = vmatprep.subr.bf16.mxu1 %v1388_v3 }
  0xb0   : > { %1273 = vmatmul.mubr.msk.bf16.vlgmr.msra.gmra.mrb[24].mxu0 %vm199_vm2, %v1271_v7 }
  0xb1   : > { %977 = vmatpush1.bf16.msra.mxu0 %v968_v12  ;;  %1008 = vmatprep.mubr.bf16.mxu0 %v1389_v5 }
  0xb2   : > { %1280 = vmatprep.subr.msk.bf16.mxu0 %vm203_vm1, %v1070_v13 }
  0xb5   : > { %1348 = vmatmul.mubr.msk.bf16.vlgmr.msra.gmra.mrb[28].mxu1 %vm199_vm2, %v1275_v14 }
  0xb6   : > { %1352 = vmatpush3.bf16.msra.mxu1 %v1081_v15  ;;  %1353 = vmatprep.mubr.msk.bf16.mxu1 %vm1390_vm0, %v1388_v3 }
  0xb8   : > { %1277 = vmatmul.mubr.msk.bf16.vlgmr.msra.gmra.mrb[28].mxu0 %vm199_vm2, %v1275_v14 }
  0xb9   : > { %1084 = vmatpush1.bf16.msra.mxu0 %v1075_v17  ;;  %1115 = vmatprep.mubr.bf16.mxu0 %v1389_v5 }
  0xbd   : > { %1354 = vmatmul.mubr.msk.bf16.vlgmr.msra.gmra.mrb[32].mxu1 %vm199_vm2, %v1279_v18 }
  0xc0   : > { %1281 = vmatmul.mubr.msk.bf16.vlgmr.msra.gmra.mrb[32].mxu0 %vm199_vm2, %v1279_v18 }
  0xed   : > { %v247_v19 = vpop.f32.mrb[0].mxu0 }
  0xee   : > { %v249_v20 = vpop.f32.mrb[1].mxu0  ;;  %v288_v21 = vpop.f32.mrb[0].mxu1 }
  0xef   : > { %v251_v22 = vpop.f32.mrb[2].mxu0  ;;  %v1307_v23 = vpop.f32.mrb[1].mxu1 }
  0xf0   : > { %v252_v24 = vpop.f32.mrb[3].mxu0  ;;  %v291_v3 = vpop.f32.mrb[2].mxu1 }
  0xf1   : > { %v1308_v25 = vpop.f32.mrb[3].mxu1 }
  0xf5   : > { %v357_v26 = vpop.f32.mrb[4].mxu0 }
  0xf6   : > { %v358_v27 = vadd.f32 %v357_v26, %v247_v19  ;;  %v359_v28 = vpop.f32.mrb[5].mxu0  ;;  %v398_v5 = vpop.f32.mrb[4].mxu1 }
  0xf7   : > { %v360_v29 = vadd.f32 %v359_v28, %v249_v20  ;;  %v399_v30 = vadd.f32 %v398_v5, %v288_v21  ;;  %v1313_v31 = vpop.f32.mrb[5].mxu1  ;;  %v361_v32 = vpop.f32.mrb[6].mxu0 }
  0xf8   : > { %v401_v33 = vpop.f32.mrb[6].mxu1  ;;  %v362_v34 = vpop.f32.mrb[7].mxu0 }
  0xf9   : > { %v1314_v35 = vpop.f32.mrb[7].mxu1 }
 0x160   : > { %v502_v36 = vpop.f32.mrb[8].mxu1 }
 0x161   : > { %v510_v37 = vadd.f32 %v502_v36, %v399_v30  ;;  %v1319_v38 = vpop.f32.mrb[9].mxu1 }
 0x162   : > { %v505_v39 = vpop.f32.mrb[10].mxu1 }
 0x163   : > { %v461_v40 = vpop.f32.mrb[8].mxu0  ;;  %v1320_v41 = vpop.f32.mrb[11].mxu1 }
 0x164   : > { %v508_v42 = vadd.f32 %v461_v40, %v358_v27  ;;  %v463_v43 = vpop.f32.mrb[9].mxu0  ;;  %v1171_v39 = vpop.permute.xlu1 %1170 }
 0x165   : > { %v509_v44 = vadd.f32 %v463_v43, %v360_v29  ;;  %v465_v45 = vpop.f32.mrb[10].mxu0 }
 0x166   : > { %v466_v46 = vpop.f32.mrb[11].mxu0 }
 0x168   : > { %v617_v47 = vpop.f32.mrb[12].mxu1 }
 0x169   : > { %v625_v48 = vadd.f32 %v617_v47, %v510_v37  ;;  %v1325_v49 = vpop.f32.mrb[13].mxu1 }
 0x16a   : > { %v620_v50 = vpop.f32.mrb[14].mxu1 }
 0x16b   : > { %v576_v51 = vpop.f32.mrb[12].mxu0  ;;  %v1326_v52 = vpop.f32.mrb[15].mxu1 }
 0x16c   : > { %v623_v53 = vadd.f32 %v576_v51, %v508_v42  ;;  %v578_v54 = vpop.f32.mrb[13].mxu0 }
 0x16d   : > { %v624_v55 = vadd.f32 %v578_v54, %v509_v44  ;;  %v580_v56 = vpop.f32.mrb[14].mxu0 }
 0x16e   : > { %v581_v57 = vpop.f32.mrb[15].mxu0 }
 0x170   : > { %v732_v58 = vpop.f32.mrb[16].mxu1 }
 0x171   : > { %v740_v59 = vadd.f32 %v732_v58, %v625_v48  ;;  %v1331_v60 = vpop.f32.mrb[17].mxu1 }
 0x172   : > { %v735_v61 = vpop.f32.mrb[18].mxu1 }
 0x173   : > { %v691_v62 = vpop.f32.mrb[16].mxu0  ;;  %v1332_v63 = vpop.f32.mrb[19].mxu1 }
 0x174   : > { %v738_v0 = vadd.f32 %v691_v62, %v623_v53  ;;  %v693_v1 = vpop.f32.mrb[17].mxu0 }
 0x175   : > { %v739_v2 = vadd.f32 %v693_v1, %v624_v55  ;;  %v695_v4 = vpop.f32.mrb[18].mxu0 }
 0x176   : > { %v696_v6 = vpop.f32.mrb[19].mxu0 }
 0x178   : > { %v838_v7 = vpop.f32.mrb[20].mxu1 }
 0x179   : > { %v846_v8 = vadd.f32 %v838_v7, %v740_v59  ;;  %v1337_v9 = vpop.f32.mrb[21].mxu1 }
 0x17a   : > { %v841_v10 = vpop.f32.mrb[22].mxu1 }
 0x17b   : > { %v797_v11 = vpop.f32.mrb[20].mxu0  ;;  %v1338_v12 = vpop.f32.mrb[23].mxu1 }
 0x17c   : > { %v844_v13 = vadd.f32 %v797_v11, %v738_v0  ;;  %v799_v14 = vpop.f32.mrb[21].mxu0 }
 0x17d   : > { %v845_v15 = vadd.f32 %v799_v14, %v739_v2  ;;  %v801_v16 = vpop.f32.mrb[22].mxu0 }
 0x17e   : > { %v802_v17 = vpop.f32.mrb[23].mxu0 }
 0x180   : > { %v945_v18 = vpop.f32.mrb[24].mxu1 }
 0x181   : > { %v953_v19 = vadd.f32 %v945_v18, %v846_v8  ;;  %v1343_v20 = vpop.f32.mrb[25].mxu1 }
 0x182   : > { %v948_v21 = vpop.f32.mrb[26].mxu1 }
 0x183   : > { %v904_v22 = vpop.f32.mrb[24].mxu0  ;;  %v1344_v23 = vpop.f32.mrb[27].mxu1 }
 0x184   : > { %v951_v24 = vadd.f32 %v904_v22, %v844_v13  ;;  %v906_v3 = vpop.f32.mrb[25].mxu0 }
 0x185   : > { %v952_v25 = vadd.f32 %v906_v3, %v845_v15  ;;  %v908_v26 = vpop.f32.mrb[26].mxu0 }
 0x186   : > { %v909_v27 = vpop.f32.mrb[27].mxu0 }
 0x188   : > { %v1051_v28 = vpop.f32.mrb[28].mxu1 }
 0x189   : > { %v1059_v5 = vadd.f32 %v1051_v28, %v953_v19  ;;  %v1349_v29 = vpop.f32.mrb[29].mxu1 }
 0x18a   : > { %v1054_v30 = vpop.f32.mrb[30].mxu1 }
 0x18b   : > { %v1010_v31 = vpop.f32.mrb[28].mxu0  ;;  %v1350_v32 = vpop.f32.mrb[31].mxu1 }
 0x18c   : > { %v1057_v33 = vadd.f32 %v1010_v31, %v951_v24  ;;  %v1012_v34 = vpop.f32.mrb[29].mxu0 }
 0x18d   : > { %v1058_v35 = vadd.f32 %v1012_v34, %v952_v25  ;;  %v1014_v36 = vpop.f32.mrb[30].mxu0 }
 0x18e   : > { %v1015_v37 = vpop.f32.mrb[31].mxu0 }
 0x190   : > { %v1158_v38 = vpop.f32.mrb[32].mxu1 }
 0x191   : > { %v1166_v40 = vadd.f32 %v1158_v38, %v1059_v5  ;;  %v1355_v41 = vpop.f32.mrb[33].mxu1 }
 0x192   : > { %v1161_v42 = vpop.f32.mrb[34].mxu1 }
 0x193   : > { %v1175_v43 = vadd.f32 %v1171_v39, %v1166_v40  ;;  %v1117_v44 = vpop.f32.mrb[32].mxu0  ;;  %v1356_v45 = vpop.f32.mrb[35].mxu1 }
 0x194   : > { %v1164_v46 = vadd.f32 %v1117_v44, %v1057_v33  ;;  %v1119_v47 = vpop.f32.mrb[33].mxu0 }
 0x195   : > { %v1178_v48 = vmax.f32 %v1175_v43, 0.0  ;;  %v1165_v49 = vadd.f32 %v1119_v47, %v1058_v35  ;;  %v1121_v50 = vpop.f32.mrb[34].mxu0 }
 0x196   : > { %v1173_v51 = vadd.f32 %v1171_v39, %v1164_v46  ;;  %v1122_v52 = vpop.f32.mrb[35].mxu0 }
 0x197   : > { %1182 = vst.msk [vmem:[%s170_s19 + $0x10] sm:$0xff] %vm1181_vm6, %v1178_v48  ;;  %v1174_v53 = vadd.f32 %v1171_v39, %v1165_v49 }
 0x198   : > { %v1176_v54 = vmax.f32 %v1173_v51, 0.0 }
 0x199   : > { %v1177_v55 = vmax.f32 %v1174_v53, 0.0 }
 0x19a   : > { %1179 = vst [vmem:[%s170_s19] sm:$0xff] %v1176_v54 }
 0x19b   : > { %1180 = vst [vmem:[%s170_s19 + $0x8] sm:$0xff] %v1177_v55 }
 0x19c PF: > { %s13_s12 = sadd.s32 1, %s1385_s12  }
 0x19d   : > { %p10_p4 = scmp.ge.s32.totalorder %s13_s12, 4  }
 0x19f   :  { %12 = sbr.rel (!%p10_p4) target bundleno = 1 (0x1), region = 73 }

// kernel: _lambda_.3
= control target key start
LH: loop header
LB: loop body
LE: loop exit
PB: predicated region body
PF: predicated region fallthrough
CT: control target
= control target key end

     0   :  { %s969_s12 = smov 0   ;;  %s1077_s0 = inlined_call_operand.vmem [shape: bf16[2,4,8,128], index: 0, kind: input, shape index: {}]   ;;  %s1078_s1 = inlined_call_operand.vmem [shape: bf16[3,3,16,8], index: 1, kind: input, shape index: {}]   ;;  %s1079_s2 = inlined_call_operand.vmem [shape: f32[16,1], index: 2, kind: input, shape index: {}]   ;;  %s1080_s3 = inlined_call_operand.vmem [shape: f32[2,16,72], index: 3, kind: output, shape index: {}]  }
   0x1 LB: > { %s782_s13 = sadd.s32 4294967295, %s941_s12   ;;  %p786_p0 = scmp.ge.s32.totalorder %s941_s12, 1  ;;  %s941_s12 = sphi %s969_s12, %s13_s12  }
   0x2   : > { %p137_p1 = scmp.lt.s32.totalorder %s941_s12, 3 }
   0x4   : > { %p138_p2 = pnand %p786_p0, %p137_p1 }
   0x5   : > { %p161_p3 = scmp.lt.s32.totalorder (!%p138_p2), %s782_s13, 1  ;;  %v943_v0 = vmov (!%p138_p2), 0.0   ;;  %vm944_vm0 = vmmov (!%p138_p2), 0   ;;  %vm193_vm1 = vcmask (!%p138_p2), 1043456   ;;  %v926_v6 = vld [vmem:[%s1078_s1 + $0x8] sm:$0xff] (!%p138_p2)   ;;  %vm189_vm2 = vcmask (!%p138_p2), 64512  }
   0x6   : > { %141 = sbr.rel (%p138_p2) target bundleno = 383 (0x17f), region = 32  ;;  %853 = vmatprep.subr.bf16.mxu0 (!%p138_p2), %v943_v0  ;;  %859 = vmatprep.subr.bf16.mxu1 (!%p138_p2), %v943_v0  ;;  %s945_s20 = smov (!%p138_p2), 127   ;;  %v927_v10 = vld [vmem:[%s1078_s1] sm:$0xff] (!%p138_p2)   ;;  %v929_v12 = vld [vmem:[%s1078_s1 + $0x18] sm:$0xff] (!%p138_p2)   ;;  %v709_v14 = vld [vmem:[%s1079_s2 + $0x8] sm:$0xff] (!%p138_p2)  ;;  %v948_v15 = vmov (!%p138_p2), 0  }
   0x7   : > { %855 = vmatprep.mubr.msk.bf16.mxu0 (!%p138_p2), %vm944_vm0, %v943_v0  ;;  %861 = vmatprep.mubr.msk.bf16.mxu1 (!%p138_p2), %vm944_vm0, %v943_v0  ;;  %s946_s21 = smov (!%p138_p2), 119   ;;  %s947_s24 = smov (!%p138_p2), 118   ;;  %v708_v13 = vld [vmem:[%s1079_s2] sm:$0xff] (!%p138_p2)  ;;  %v928_v20 = vld [vmem:[%s1078_s1 + $0x10] sm:$0xff] (!%p138_p2)   ;;  %v931_v25 = vld [vmem:[%s1078_s1 + $0x28] sm:$0xff] (!%p138_p2)   ;;  %vm724_vm3 = vcmask (!%p138_p2), 588800  }
   0x8   : > { %921 = vset.pattern.permute.xlu1 (!%p138_p2), %v948_v15  ;;  %922 = vset.pattern.permute.xlu0 (!%p138_p2), %v948_v15  ;;  %v930_v27 = vld [vmem:[%s1078_s1 + $0x20] sm:$0xff] (!%p138_p2)   ;;  %v933_v29 = vld [vmem:[%s1078_s1 + $0x38] sm:$0xff] (!%p138_p2)   ;;  %v932_v31 = vld [vmem:[%s1078_s1 + $0x30] sm:$0xff] (!%p138_p2)  }
   0x9   : > { %v934_v33 = vld [vmem:[%s1078_s1 + $0x40] sm:$0xff] (!%p138_p2)  }
   0xd   : > { %s1082_s13 = smov (!%p161_p3, %s782_s13), 1 }
   0xe   : > { %s833_s14 = sshll.u32 %s1082_s13, 4 }
   0xf   : > { %s991_s17 = scalar_lea.vmem %s1077_s0, %s833_s14 }
  0x10   : > { %v172_v1 = vld [vmem:[%s991_s17] sm:$0xf]  ;;  %v792_v2 = vld [vmem:[%s991_s17 + $0x8] sm:$0xf]  ;;  %v791_v3 = vld [vmem:[%s991_s17 + $0x4] sm:$0xf] }
  0x11   : > { %v803_v4 = vcombine.low %v172_v1, %v172_v1  ;;  %v195_v5 = vsel %vm193_vm1, %v791_v3, 0  ;;  %v247_v7 = vsel %vm193_vm1, %v172_v1, 0  ;;  %v816_v8 = vcombine.low %v792_v2, %v792_v2  ;;  %v793_v17 = vld [vmem:[%s991_s17 + $0xc] sm:$0xf] }
  0x12   : > { %854 = vmatpush3.bf16.msra.mxu0 %v195_v5  ;;  %v825_v9 = vcombine.low %v791_v3, %v791_v3  ;;  %860 = vmatpush3.bf16.msra.mxu1 %v247_v7  ;;  %v364_v11 = vsel %vm193_vm1, %v792_v2, 0  ;;  %v421_v21 = vsel %vm193_vm1, %v793_v17, 0 }
  0x13   : > { %301 = vrot.lane.b32.xlu0 %v803_v4, %s945_s20  ;;  %536 = vrot.lane.b32.xlu1 %v803_v4, %s946_s21 }
  0x14   : > { %865 = vmatprep.subr.bf16.mxu0 %v943_v0  ;;  %871 = vmatprep.subr.bf16.mxu1 %v943_v0 }
  0x15   : > { %856 = vmatmul.mubr.msk.bf16.vlgmr.msra.gmra.mrb[0].mxu0 %vm189_vm2, %v926_v6  ;;  %862 = vmatmul.mubr.msk.bf16.vlgmr.msra.gmra.mrb[0].mxu1 %vm189_vm2, %v927_v10 }
  0x16   : > { %867 = vmatprep.mubr.msk.bf16.mxu0 %vm944_vm0, %v943_v0  ;;  %872 = vmatpush3.bf16.msra.mxu1 %v364_v11 }
  0x17   : > { %477 = vrot.lane.b32.xlu0 %v816_v8, %s945_s20  ;;  %598 = vrot.lane.b32.xlu1 %v825_v9, %s946_s21  ;;  %s170_s21 = scalar_lea.vmem %s1080_s3, %s833_s14 }
  0x18   : > { %873 = vmatprep.mubr.msk.bf16.mxu1 %vm944_vm0, %v943_v0  ;;  %883 = vmatprep.subr.bf16.mxu1 %v943_v0 }
  0x1b   : > { %657 = vrot.lane.b32.xlu0 %v803_v4, %s947_s24  ;;  %712 = vperm.xlu1 %921, %v708_v13  }
  0x1d   : > { %874 = vmatmul.mubr.msk.bf16.vlgmr.msra.gmra.mrb[4].mxu1 %vm189_vm2, %v929_v12 }
  0x1e   : > { %885 = vmatprep.mubr.msk.bf16.mxu1 %vm944_vm0, %v943_v0 }
  0x1f   : > { %717 = vperm.xlu0 %922, %v709_v14  }
  0x85   : > { %v302_v16 = vpop.permute.xlu0 %301  ;;  %v537_v18 = vpop.permute.xlu1 %536 }
  0x86   : > { %v307_v19 = vsel %vm193_vm1, %v302_v16, 0  ;;  %v542_v28 = vsel %vm193_vm1, %v537_v18, 0 }
  0x87   : > { %866 = vmatpush3.bf16.msra.mxu0 %v307_v19 }
  0x88   : > { %877 = vmatprep.subr.bf16.mxu0 %v943_v0 }
  0x89   : > { %v478_v22 = vpop.permute.xlu0 %477  ;;  %v599_v24 = vpop.permute.xlu1 %598 }
  0x8a   : > { %868 = vmatmul.mubr.msk.bf16.vlgmr.msra.gmra.mrb[4].mxu0 %vm189_vm2, %v928_v20  ;;  %v483_v23 = vsel %vm193_vm1, %v478_v22, 0  ;;  %v604_v26 = vsel %vm193_vm1, %v599_v24, 0 }
  0x8b   : > { %878 = vmatpush3.bf16.msra.mxu0 %v421_v21  ;;  %879 = vmatprep.mubr.msk.bf16.mxu0 %vm944_vm0, %v943_v0 }
  0x8c   : > { %884 = vmatpush3.bf16.msra.mxu1 %v483_v23  ;;  %889 = vmatprep.subr.bf16.mxu0 %v943_v0 }
  0x8d   : > { %895 = vmatprep.subr.bf16.mxu1 %v943_v0  ;;  %v658_v30 = vpop.permute.xlu0 %657 }
  0x8e   : > { %v663_v32 = vsel %vm193_vm1, %v658_v30, 0 }
  0x8f   : > { %886 = vmatmul.mubr.msk.bf16.vlgmr.msra.gmra.mrb[8].mxu1 %vm189_vm2, %v931_v25 }
  0x90   : > { %896 = vmatpush3.bf16.msra.mxu1 %v604_v26  ;;  %897 = vmatprep.mubr.msk.bf16.mxu1 %vm944_vm0, %v943_v0 }
  0x92   : > { %880 = vmatmul.mubr.msk.bf16.vlgmr.msra.gmra.mrb[8].mxu0 %vm189_vm2, %v930_v27 }
  0x93   : > { %890 = vmatpush3.bf16.msra.mxu0 %v542_v28  ;;  %891 = vmatprep.mubr.msk.bf16.mxu0 %vm944_vm0, %v943_v0 }
  0x94   : > { %901 = vmatprep.subr.bf16.mxu0 %v943_v0 }
  0x97   : > { %898 = vmatmul.mubr.msk.bf16.vlgmr.msra.gmra.mrb[12].mxu1 %vm189_vm2, %v933_v29 }
  0x9a   : > { %892 = vmatmul.mubr.msk.bf16.vlgmr.msra.gmra.mrb[12].mxu0 %vm189_vm2, %v932_v31  ;;  %v713_v17 = vpop.permute.xlu1 %712 }
  0x9b   : > { %902 = vmatpush3.bf16.msra.mxu0 %v663_v32  ;;  %903 = vmatprep.mubr.msk.bf16.mxu0 %vm944_vm0, %v943_v0 }
  0x9e   : > { %v718_v21 = vpop.permute.xlu0 %717 }
  0xa2   : > { %904 = vmatmul.mubr.msk.bf16.vlgmr.msra.gmra.mrb[16].mxu0 %vm189_vm2, %v934_v33 }
  0xe8   : > { %v231_v34 = vpop.f32.mrb[0].mxu0  ;;  %v283_v37 = vpop.f32.mrb[0].mxu1 }
  0xe9   : > { %v857_v35 = vpop.f32.mrb[1].mxu0  ;;  %v284_v39 = vadd.f32 %v283_v37, %v231_v34  ;;  %v863_v40 = vpop.f32.mrb[1].mxu1 }
  0xea   : > { %v234_v36 = vpop.f32.mrb[2].mxu0  ;;  %v286_v41 = vpop.f32.mrb[2].mxu1 }
  0xeb   : > { %v858_v38 = vpop.f32.mrb[3].mxu0  ;;  %v287_v42 = vadd.f32 %v286_v41, %v234_v36  ;;  %v864_v43 = vpop.f32.mrb[3].mxu1 }
  0xf0   : > { %v400_v44 = vpop.f32.mrb[4].mxu1 }
  0xf1   : > { %v875_v45 = vpop.f32.mrb[5].mxu1 }
  0xf2   : > { %v403_v46 = vpop.f32.mrb[6].mxu1 }
  0xf3   : > { %v876_v47 = vpop.f32.mrb[7].mxu1 }
 0x15d   : > { %v343_v48 = vpop.f32.mrb[4].mxu0 }
 0x15e   : > { %v350_v49 = vadd.f32 %v343_v48, %v284_v39  ;;  %v869_v50 = vpop.f32.mrb[5].mxu0 }
 0x15f   : > { %v346_v51 = vpop.f32.mrb[6].mxu0 }
 0x160   : > { %v351_v52 = vadd.f32 %v346_v51, %v287_v42  ;;  %v407_v53 = vadd.f32 %v400_v44, %v350_v49  ;;  %v870_v54 = vpop.f32.mrb[7].mxu0 }
 0x162   : > { %v408_v55 = vadd.f32 %v403_v46, %v351_v52  ;;  %v519_v56 = vpop.f32.mrb[8].mxu1 }
 0x163   : > { %v887_v57 = vpop.f32.mrb[9].mxu1 }
 0x164   : > { %v522_v58 = vpop.f32.mrb[10].mxu1 }
 0x165   : > { %v457_v59 = vpop.f32.mrb[8].mxu0  ;;  %v888_v60 = vpop.f32.mrb[11].mxu1 }
 0x166   : > { %v464_v61 = vadd.f32 %v457_v59, %v407_v53  ;;  %v881_v62 = vpop.f32.mrb[9].mxu0 }
 0x167   : > { %v460_v63 = vpop.f32.mrb[10].mxu0 }
 0x168   : > { %v465_v0 = vadd.f32 %v460_v63, %v408_v55  ;;  %v526_v1 = vadd.f32 %v519_v56, %v464_v61  ;;  %v882_v2 = vpop.f32.mrb[11].mxu0 }
 0x16a   : > { %v527_v3 = vadd.f32 %v522_v58, %v465_v0  ;;  %v640_v4 = vpop.f32.mrb[12].mxu1 }
 0x16b   : > { %v899_v5 = vpop.f32.mrb[13].mxu1 }
 0x16c   : > { %v643_v6 = vpop.f32.mrb[14].mxu1 }
 0x16d   : > { %v578_v7 = vpop.f32.mrb[12].mxu0  ;;  %v900_v8 = vpop.f32.mrb[15].mxu1 }
 0x16e   : > { %v585_v9 = vadd.f32 %v578_v7, %v526_v1  ;;  %v893_v10 = vpop.f32.mrb[13].mxu0 }
 0x16f   : > { %v581_v11 = vpop.f32.mrb[14].mxu0 }
 0x170   : > { %v586_v12 = vadd.f32 %v581_v11, %v527_v3  ;;  %v647_v13 = vadd.f32 %v640_v4, %v585_v9  ;;  %v894_v14 = vpop.f32.mrb[15].mxu0 }
 0x172   : > { %v648_v15 = vadd.f32 %v643_v6, %v586_v12 }
 0x175   : > { %v699_v16 = vpop.f32.mrb[16].mxu0 }
 0x176   : > { %v706_v18 = vadd.f32 %v699_v16, %v647_v13  ;;  %v905_v19 = vpop.f32.mrb[17].mxu0 }
 0x177   : > { %v702_v20 = vpop.f32.mrb[18].mxu0 }
 0x178   : > { %v720_v22 = vadd.f32 %v713_v17, %v706_v18  ;;  %v707_v23 = vadd.f32 %v702_v20, %v648_v15  ;;  %v906_v24 = vpop.f32.mrb[19].mxu0 }
 0x17a   : > { %v722_v25 = vmax.f32 %v720_v22, 0.0  ;;  %v721_v26 = vadd.f32 %v718_v21, %v707_v23 }
 0x17c   : > { %725 = vst.msk [vmem:[%s170_s21] sm:$0xff] %vm724_vm3, %v722_v25  ;;  %v723_v27 = vmax.f32 %v721_v26, 0.0 }
 0x17e   : > { %726 = vst.msk [vmem:[%s170_s21 + $0x8] sm:$0xff] %vm724_vm3, %v723_v27 }
 0x17f PF: > { %s13_s12 = sadd.s32 1, %s941_s12  }
 0x180   : > { %p10_p4 = scmp.ge.s32.totalorder %s13_s12, 4  }
 0x182   :  { %12 = sbr.rel (!%p10_p4) target bundleno = 1 (0x1), region = 73 }

</bundles_post_ra>
